<compile_context>
chip_gen: v7x
topology: tpu7x:2x2x1
jax: 0.10.0
libtpu: 0.0.40
codegen_flags: <defaults>
</compile_context>

<pallas_src>
import jax
import jax.numpy as jnp
from jax.experimental import pallas as pl
from jax.experimental.pallas import tpu as pltpu


def rnn_kernel(x_ref, wxT_ref, whT_ref, bhT_ref, wyT_ref, byT_ref, y_ref, hs_ref):
    """Sequential RNN recurrence; all operands resident in VMEM (small model)."""
    T = x_ref.shape[0]
    H = whT_ref.shape[0]

    whT = whT_ref[...]

    # Hoisted input projection (+ hidden bias): one (T, I) @ (I, H) matmul.
    xp = (
        jnp.dot(x_ref[...], wxT_ref[...], preferred_element_type=jnp.float32)
        + bhT_ref[...]
    )

    # Serial recurrence, fully unrolled (T is small and static). Per step the
    # critical path is a single tiny (1,H)@(H,H) matmul plus tanh; the scratch
    # store of h_t is off the critical path.
    h_t = jnp.zeros((1, H), jnp.float32)
    for t in range(T):
        h_t = jnp.tanh(
            xp[t : t + 1, :]
            + jnp.dot(h_t, whT, preferred_element_type=jnp.float32)
        )
        hs_ref[t : t + 1, :] = h_t

    # Deferred output projection: one (T, H) @ (H, O) matmul, single store.
    y_ref[...] = (
        jnp.dot(hs_ref[...], wyT_ref[...], preferred_element_type=jnp.float32)
        + byT_ref[...]
    ).astype(y_ref.dtype)


def rnn_forward(x, Wx, Wh, Wy, bh, by):
    """x: (T, input_size). Returns flat (T*output_size,) like torch.cat(...).view(-1)."""
    T, _ = x.shape
    H, _I = Wx.shape
    O = Wy.shape[0]

    wxT = Wx.T                  # (I, H)
    whT = Wh.T                  # (H, H)
    wyT = Wy.T                  # (H, O)
    bhT = bh.reshape(1, H)      # (1, H)
    byT = by.reshape(1, O)      # (1, O)

    vmem_spec = pl.BlockSpec(memory_space=pltpu.MemorySpace.VMEM)

    y = pl.pallas_call(
        rnn_kernel,
        out_shape=jax.ShapeDtypeStruct((T, O), jnp.float32),
        in_specs=[vmem_spec] * 6,
        out_specs=vmem_spec,
        scratch_shapes=[pltpu.VMEM((T, H), jnp.float32)],
    )(x, wxT, whT, bhT, wyT, byT)

    return y.reshape(-1)


def rnn_reference(x, Wx, Wh, Wy, bh, by):
    """Pure-JAX reference mirroring the PyTorch loop (column-vector form)."""
    H = Wx.shape[0]
    h = jnp.zeros((H, 1), jnp.float32)
    ys = []
    for t in range(x.shape[0]):
        x_t = x[t].reshape(-1, 1)
        h = jnp.tanh(Wx @ x_t + Wh @ h + bh)
        ys.append(Wy @ h + by)
    return jnp.concatenate(ys, axis=0).reshape(-1)


if __name__ == "__main__":
    input_size, hidden_size, output_size = 16, 32, 8
    seq_len = 8

    key = jax.random.PRNGKey(0)
    k_x, k_wx, k_wh, k_wy = jax.random.split(key, 4)

    # Deterministic parameter init matching the module's __init__ scaling.
    Wx = jax.random.normal(k_wx, (hidden_size, input_size), jnp.float32) * jnp.sqrt(
        2.0 / (input_size + hidden_size)
    )
    Wh = jax.random.normal(k_wh, (hidden_size, hidden_size), jnp.float32) * jnp.sqrt(
        1.0 / hidden_size
    )
    Wy = jax.random.normal(k_wy, (output_size, hidden_size), jnp.float32) * jnp.sqrt(
        2.0 / (hidden_size + output_size)
    )
    bh = jnp.zeros((hidden_size, 1), jnp.float32)
    by = jnp.zeros((output_size, 1), jnp.float32)

    x = jax.random.normal(k_x, (seq_len, input_size), jnp.float32)

    out = rnn_forward(x, Wx, Wh, Wy, bh, by)
    out = jax.block_until_ready(out)

    ref = rnn_reference(x, Wx, Wh, Wy, bh, by)
    assert out.shape == (seq_len * output_size,)
    assert jnp.allclose(out, ref, atol=1e-5, rtol=1e-5), "mismatch vs reference"

    print("KERNEL_OK")
</pallas_src>

<mosaic_0001>
module attributes {stable_mosaic.version = 11 : i64} {
  func.func @rnn_kernel(%arg0: memref<8x16xf32, #tpu.memory_space<vmem>>, %arg1: memref<16x32xf32, #tpu.memory_space<vmem>>, %arg2: memref<32x32xf32, #tpu.memory_space<vmem>>, %arg3: memref<1x32xf32, #tpu.memory_space<vmem>>, %arg4: memref<32x8xf32, #tpu.memory_space<vmem>>, %arg5: memref<1x8xf32, #tpu.memory_space<vmem>>, %arg6: memref<8x8xf32, #tpu.memory_space<vmem>>, %arg7: memref<8x32xf32, #tpu.memory_space<vmem>>) attributes {dimension_semantics = [], scalar_prefetch = 0 : i64, scratch_operands = 1 : i64, tpu.core_type = #tpu.core_type<tc>} {
    %c0 = arith.constant 0 : index
    %c0_0 = arith.constant 0 : index
    %0 = vector.load %arg2[%c0, %c0_0] : memref<32x32xf32, #tpu.memory_space<vmem>>, vector<32x32xf32>
    %c0_1 = arith.constant 0 : index
    %c0_2 = arith.constant 0 : index
    %1 = vector.load %arg0[%c0_1, %c0_2] : memref<8x16xf32, #tpu.memory_space<vmem>>, vector<8x16xf32>
    %c0_3 = arith.constant 0 : index
    %c0_4 = arith.constant 0 : index
    %2 = vector.load %arg1[%c0_3, %c0_4] : memref<16x32xf32, #tpu.memory_space<vmem>>, vector<16x32xf32>
    %cst = arith.constant dense<0.000000e+00> : vector<8x32xf32>
    %3 = tpu.matmul %1, %2, %cst {dimension_numbers = #tpu.dot_dimension_numbers<[1], [0], [0], [1], [0, 0, 1, 1], [], []>} : vector<8x16xf32>, vector<16x32xf32>, vector<8x32xf32> -> vector<8x32xf32>
    %c0_5 = arith.constant 0 : index
    %c0_6 = arith.constant 0 : index
    %4 = vector.load %arg3[%c0_5, %c0_6] : memref<1x32xf32, #tpu.memory_space<vmem>>, vector<1x32xf32>
    %5 = vector.broadcast %4 : vector<1x32xf32> to vector<8x32xf32>
    %6 = arith.addf %3, %5 : vector<8x32xf32>
    %cst_7 = arith.constant 0.000000e+00 : f32
    %7 = vector.broadcast %cst_7 : f32 to vector<1x32xf32>
    %8 = vector.extract_strided_slice %6 {offsets = [0, 0], sizes = [1, 32], strides = [1, 1]} : vector<8x32xf32> to vector<1x32xf32>
    %cst_8 = arith.constant dense<0.000000e+00> : vector<1x32xf32>
    %9 = tpu.matmul %7, %0, %cst_8 {dimension_numbers = #tpu.dot_dimension_numbers<[1], [0], [0], [1], [0, 0, 1, 1], [], []>} : vector<1x32xf32>, vector<32x32xf32>, vector<1x32xf32> -> vector<1x32xf32>
    %10 = arith.addf %8, %9 : vector<1x32xf32>
    %11 = math.tanh %10 : vector<1x32xf32>
    %c0_9 = arith.constant 0 : index
    %c0_10 = arith.constant 0 : index
    %12 = vector.load %arg7[%c0_9, %c0_10] : memref<8x32xf32, #tpu.memory_space<vmem>>, vector<1x32xf32>
    tpu.vector_store %arg7[%c0_9, %c0_10], %11 {strides = array<i32>} : memref<8x32xf32, #tpu.memory_space<vmem>>, vector<1x32xf32>,
    %13 = vector.extract_strided_slice %6 {offsets = [1, 0], sizes = [1, 32], strides = [1, 1]} : vector<8x32xf32> to vector<1x32xf32>
    %cst_11 = arith.constant dense<0.000000e+00> : vector<1x32xf32>
    %14 = tpu.matmul %11, %0, %cst_11 {dimension_numbers = #tpu.dot_dimension_numbers<[1], [0], [0], [1], [0, 0, 1, 1], [], []>} : vector<1x32xf32>, vector<32x32xf32>, vector<1x32xf32> -> vector<1x32xf32>
    %15 = arith.addf %13, %14 : vector<1x32xf32>
    %16 = math.tanh %15 : vector<1x32xf32>
    %c1 = arith.constant 1 : index
    %c0_12 = arith.constant 0 : index
    %17 = vector.load %arg7[%c1, %c0_12] : memref<8x32xf32, #tpu.memory_space<vmem>>, vector<1x32xf32>
    tpu.vector_store %arg7[%c1, %c0_12], %16 {strides = array<i32>} : memref<8x32xf32, #tpu.memory_space<vmem>>, vector<1x32xf32>,
    %18 = vector.extract_strided_slice %6 {offsets = [2, 0], sizes = [1, 32], strides = [1, 1]} : vector<8x32xf32> to vector<1x32xf32>
    %cst_13 = arith.constant dense<0.000000e+00> : vector<1x32xf32>
    %19 = tpu.matmul %16, %0, %cst_13 {dimension_numbers = #tpu.dot_dimension_numbers<[1], [0], [0], [1], [0, 0, 1, 1], [], []>} : vector<1x32xf32>, vector<32x32xf32>, vector<1x32xf32> -> vector<1x32xf32>
    %20 = arith.addf %18, %19 : vector<1x32xf32>
    %21 = math.tanh %20 : vector<1x32xf32>
    %c2 = arith.constant 2 : index
    %c0_14 = arith.constant 0 : index
    %22 = vector.load %arg7[%c2, %c0_14] : memref<8x32xf32, #tpu.memory_space<vmem>>, vector<1x32xf32>
    tpu.vector_store %arg7[%c2, %c0_14], %21 {strides = array<i32>} : memref<8x32xf32, #tpu.memory_space<vmem>>, vector<1x32xf32>,
    %23 = vector.extract_strided_slice %6 {offsets = [3, 0], sizes = [1, 32], strides = [1, 1]} : vector<8x32xf32> to vector<1x32xf32>
    %cst_15 = arith.constant dense<0.000000e+00> : vector<1x32xf32>
    %24 = tpu.matmul %21, %0, %cst_15 {dimension_numbers = #tpu.dot_dimension_numbers<[1], [0], [0], [1], [0, 0, 1, 1], [], []>} : vector<1x32xf32>, vector<32x32xf32>, vector<1x32xf32> -> vector<1x32xf32>
    %25 = arith.addf %23, %24 : vector<1x32xf32>
    %26 = math.tanh %25 : vector<1x32xf32>
    %c3 = arith.constant 3 : index
    %c0_16 = arith.constant 0 : index
    %27 = vector.load %arg7[%c3, %c0_16] : memref<8x32xf32, #tpu.memory_space<vmem>>, vector<1x32xf32>
    tpu.vector_store %arg7[%c3, %c0_16], %26 {strides = array<i32>} : memref<8x32xf32, #tpu.memory_space<vmem>>, vector<1x32xf32>,
    %28 = vector.extract_strided_slice %6 {offsets = [4, 0], sizes = [1, 32], strides = [1, 1]} : vector<8x32xf32> to vector<1x32xf32>
    %cst_17 = arith.constant dense<0.000000e+00> : vector<1x32xf32>
    %29 = tpu.matmul %26, %0, %cst_17 {dimension_numbers = #tpu.dot_dimension_numbers<[1], [0], [0], [1], [0, 0, 1, 1], [], []>} : vector<1x32xf32>, vector<32x32xf32>, vector<1x32xf32> -> vector<1x32xf32>
    %30 = arith.addf %28, %29 : vector<1x32xf32>
    %31 = math.tanh %30 : vector<1x32xf32>
    %c4 = arith.constant 4 : index
    %c0_18 = arith.constant 0 : index
    %32 = vector.load %arg7[%c4, %c0_18] : memref<8x32xf32, #tpu.memory_space<vmem>>, vector<1x32xf32>
    tpu.vector_store %arg7[%c4, %c0_18], %31 {strides = array<i32>} : memref<8x32xf32, #tpu.memory_space<vmem>>, vector<1x32xf32>,
    %33 = vector.extract_strided_slice %6 {offsets = [5, 0], sizes = [1, 32], strides = [1, 1]} : vector<8x32xf32> to vector<1x32xf32>
    %cst_19 = arith.constant dense<0.000000e+00> : vector<1x32xf32>
    %34 = tpu.matmul %31, %0, %cst_19 {dimension_numbers = #tpu.dot_dimension_numbers<[1], [0], [0], [1], [0, 0, 1, 1], [], []>} : vector<1x32xf32>, vector<32x32xf32>, vector<1x32xf32> -> vector<1x32xf32>
    %35 = arith.addf %33, %34 : vector<1x32xf32>
    %36 = math.tanh %35 : vector<1x32xf32>
    %c5 = arith.constant 5 : index
    %c0_20 = arith.constant 0 : index
    %37 = vector.load %arg7[%c5, %c0_20] : memref<8x32xf32, #tpu.memory_space<vmem>>, vector<1x32xf32>
    tpu.vector_store %arg7[%c5, %c0_20], %36 {strides = array<i32>} : memref<8x32xf32, #tpu.memory_space<vmem>>, vector<1x32xf32>,
    %38 = vector.extract_strided_slice %6 {offsets = [6, 0], sizes = [1, 32], strides = [1, 1]} : vector<8x32xf32> to vector<1x32xf32>
    %cst_21 = arith.constant dense<0.000000e+00> : vector<1x32xf32>
    %39 = tpu.matmul %36, %0, %cst_21 {dimension_numbers = #tpu.dot_dimension_numbers<[1], [0], [0], [1], [0, 0, 1, 1], [], []>} : vector<1x32xf32>, vector<32x32xf32>, vector<1x32xf32> -> vector<1x32xf32>
    %40 = arith.addf %38, %39 : vector<1x32xf32>
    %41 = math.tanh %40 : vector<1x32xf32>
    %c6 = arith.constant 6 : index
    %c0_22 = arith.constant 0 : index
    %42 = vector.load %arg7[%c6, %c0_22] : memref<8x32xf32, #tpu.memory_space<vmem>>, vector<1x32xf32>
    tpu.vector_store %arg7[%c6, %c0_22], %41 {strides = array<i32>} : memref<8x32xf32, #tpu.memory_space<vmem>>, vector<1x32xf32>,
    %43 = vector.extract_strided_slice %6 {offsets = [7, 0], sizes = [1, 32], strides = [1, 1]} : vector<8x32xf32> to vector<1x32xf32>
    %cst_23 = arith.constant dense<0.000000e+00> : vector<1x32xf32>
    %44 = tpu.matmul %41, %0, %cst_23 {dimension_numbers = #tpu.dot_dimension_numbers<[1], [0], [0], [1], [0, 0, 1, 1], [], []>} : vector<1x32xf32>, vector<32x32xf32>, vector<1x32xf32> -> vector<1x32xf32>
    %45 = arith.addf %43, %44 : vector<1x32xf32>
    %46 = math.tanh %45 : vector<1x32xf32>
    %c7 = arith.constant 7 : index
    %c0_24 = arith.constant 0 : index
    %47 = vector.load %arg7[%c7, %c0_24] : memref<8x32xf32, #tpu.memory_space<vmem>>, vector<1x32xf32>
    tpu.vector_store %arg7[%c7, %c0_24], %46 {strides = array<i32>} : memref<8x32xf32, #tpu.memory_space<vmem>>, vector<1x32xf32>,
    %c0_25 = arith.constant 0 : index
    %c0_26 = arith.constant 0 : index
    %48 = vector.load %arg7[%c0_25, %c0_26] : memref<8x32xf32, #tpu.memory_space<vmem>>, vector<8x32xf32>
    %c0_27 = arith.constant 0 : index
    %c0_28 = arith.constant 0 : index
    %49 = vector.load %arg4[%c0_27, %c0_28] : memref<32x8xf32, #tpu.memory_space<vmem>>, vector<32x8xf32>
    %cst_29 = arith.constant dense<0.000000e+00> : vector<8x8xf32>
    %50 = tpu.matmul %48, %49, %cst_29 {dimension_numbers = #tpu.dot_dimension_numbers<[1], [0], [0], [1], [0, 0, 1, 1], [], []>} : vector<8x32xf32>, vector<32x8xf32>, vector<8x8xf32> -> vector<8x8xf32>
    %c0_30 = arith.constant 0 : index
    %c0_31 = arith.constant 0 : index
    %51 = vector.load %arg5[%c0_30, %c0_31] : memref<1x8xf32, #tpu.memory_space<vmem>>, vector<1x8xf32>
    %52 = vector.broadcast %51 : vector<1x8xf32> to vector<8x8xf32>
    %53 = arith.addf %50, %52 : vector<8x8xf32>
    %c0_32 = arith.constant 0 : index
    %c0_33 = arith.constant 0 : index
    %54 = vector.load %arg6[%c0_32, %c0_33] : memref<8x8xf32, #tpu.memory_space<vmem>>, vector<8x8xf32>
    tpu.vector_store %arg6[%c0_32, %c0_33], %53 {strides = array<i32>} : memref<8x8xf32, #tpu.memory_space<vmem>>, vector<8x8xf32>,
    return
  }
}

</mosaic_0001>

<bundles_post_ra>
// kernel: tpu_custom_call.1
= control target key start
LH: loop header
LB: loop body
LE: loop exit
PB: predicated region body
PF: predicated region fallthrough
CT: control target
= control target key end

     0   :  { %11 = vsyncpa [#allocation4], 0  ;;  %s1342_s0 = inlined_call_operand.vmem [shape: f32[8,16], index: 0, kind: input, shape index: {}]   ;;  %s1343_s1 = inlined_call_operand.hbm [shape: f32[16,32], index: 1, kind: input, shape index: {}]   ;;  %s1344_s2 = inlined_call_operand.vmem [shape: f32[32,32], index: 2, kind: input, shape index: {}]   ;;  %s1345_s3 = inlined_call_operand.vmem [shape: f32[1,32], index: 3, kind: input, shape index: {}]   ;;  %s1346_s4 = inlined_call_operand.vmem [shape: f32[32,8], index: 4, kind: input, shape index: {}]   ;;  %s1347_s5 = inlined_call_operand.vmem [shape: f32[1,8], index: 5, kind: input, shape index: {}]   ;;  %s1348_s6 = inlined_call_operand.hbm [shape: f32[8,8], index: 6, kind: output, shape index: {}]  }
   0x1   :  { %12 = vsyncpa [#allocation5], 0  ;;  %s1165_s21 = smov [#allocation3]   ;;  %s1117_s25 = scalar_lea.hbm %s1343_s1, 256 }
   0x2   :  { %s20_s22 = sshll.u32 %s1165_s21, 4  ;;  %p1118_p0 = scmp.ne.s32.totalorder %s1343_s1, %s1117_s25  ;;  %s21_s22 = int_to_ptr.vmem [resolvable:$true] %s20_s22 }
   0x3   :  { %p1121_p1 = scmp.lt.u32.totalorder %s1117_s25, %s1343_s1 }
   0x5   :  { %p1123_p2 = pnand %p1121_p1, %p1118_p0 }
   0x7   :  { %1126 = shalt.err (!%p1123_p2)
}
   0x8   :  { %s1127_s30 = scalar_lea.vmem %s21_s22, 256  ;;  %p1132_p4 = scmp.lt.s32.totalorder %s21_s22, %s21_s22 }
   0x9   :  { %p1128_p3 = scmp.ne.s32.totalorder %s21_s22, %s1127_s30  ;;  %p1133_p5 = scmp.lt.s32.totalorder %s1127_s30, %s1127_s30 }
   0xb   :  { %p1134_p6 = por %p1133_p5, %p1132_p4 }
   0xd   :  { %p1135_p7 = pnand %p1134_p6, %p1128_p3 }
   0xf   :  { %1138 = shalt.err (!%p1135_p7)
}
  0x10   :  { %s1166_s7 = smov 128   ;;  %s1167_s8 = smov 8  }
  0x11   :  { %26 = dma.hbm_to_vmem [thread:$0]  %s1343_s1, 256, %s21_s22, [#allocation4], %s1166_s7, %s1166_s7, %s1167_s8  }
  0x12   :  { %1161 = dma.done.wait [#allocation4], 256  }
  0x13   :  { %1162 = vsyncadd [#allocation4], 4294967040  ;;  %v1168_v0 = vmov 0.0|0.0   ;;  %vm1169_vm0 = vmmov 0   ;;  %v1170_v1 = vmov 0.0   ;;  %v38_v2 = vld [vmem:[%s1344_s2] sm:$0xff] }
  0x14   :  { %1040 = vmatprep.subr.bf16.mxu1 %v1168_v0  ;;  %1037 = vmatprep.subr.bf16.mxu0 %v1168_v0  ;;  %v39_v3 = vld [vmem:[%s1344_s2 + $0x8] sm:$0xff]  ;;  %v44_v6 = vld [vmem:[#allocation3 + $0x8] sm:$0xff]  ;;  %v41_v9 = vld [vmem:[%s1344_s2 + $0x18] sm:$0xff]  ;;  %vm52_vm1 = vcmask 130048   ;;  %vm202_vm2 = vcmask 253952   ;;  %vm126_vm3 = vcmask 261120  }
  0x15   :  { %935 = vmatprep.mubr.msk.f32.mxu0 %vm1169_vm0, %v1170_v1  ;;  %946 = vmatprep.mubr.msk.f32.mxu1 %vm1169_vm0, %v1170_v1  ;;  %v43_v4 = vld [vmem:[#allocation3] sm:$0xff]  ;;  %v1231_v5 = vpack.c.bf16 %v39_v3, %v38_v2  ;;  %v40_v7 = vld [vmem:[%s1344_s2 + $0x10] sm:$0xff]  ;;  %v42_v11 = vld [vmem:[%s1342_s0] sm:$0xff]  ;;  %vm282_vm4 = vcmask 254977   ;;  %vm363_vm5 = vcmask 256002   ;;  %vm444_vm6 = vcmask 257027  }
  0x16   :  { %v1038_v8 = vpack.c.bf16 %v44_v6, %v43_v4  ;;  %v1240_v10 = vpack.c.bf16 %v41_v9, %v40_v7  ;;  %v872_v12 = vld [vmem:[%s1345_s3] ss:$0 sm:$0xff]  ;;  %vm525_vm7 = vcmask 258052   ;;  %vm606_vm8 = vcmask 259077   ;;  %v772_v57 = vld [vmem:[%s1346_s4 + $0x8] sm:$0xff]  ;;  %v773_v59 = vld [vmem:[%s1346_s4 + $0x10] sm:$0xff] }
  0x17   :  { %1042 = vmatpush3.bf16.msra.mxu1 %v1231_v5  ;;  %vm687_vm9 = vcmask 260102   ;;  %v771_v56 = vld [vmem:[%s1346_s4] sm:$0xff]  ;;  %v774_v60 = vld [vmem:[%s1346_s4 + $0x18] sm:$0xff]  ;;  %vm768_vm10 = vcmask 261127   ;;  %s1171_s4 = smov [#allocation6]   ;;  %vm855_vm11 = vcmask 64512  }
  0x18   :  { %1039 = vmatpush3.bf16.msra.mxu0 %v1038_v8  ;;  %1043 = vmatprep.subr.bf16.mxu1 %v1168_v0  ;;  %v1089_v58 = vpack.c.bf16 %v772_v57, %v771_v56  ;;  %v1092_v61 = vpack.c.bf16 %v774_v60, %v773_v59  ;;  %s863_s29 = sshll.u32 %s1171_s4, 4  ;;  %s864_s29 = int_to_ptr.vmem [resolvable:$true] %s863_s29 }
  0x19   :  { %1046 = vmatprep.subr.bf16.mxu0 %v1168_v0  ;;  %s1139_s30 = scalar_lea.vmem %s864_s29, 128  ;;  %p1144_p9 = scmp.lt.s32.totalorder %s864_s29, %s864_s29 }
  0x1a   :  { %p1140_p8 = scmp.ne.s32.totalorder %s864_s29, %s1139_s30  ;;  %p1145_p10 = scmp.lt.s32.totalorder %s1139_s30, %s1139_s30 }
  0x1b   :  { %936 = vmatmul.mubr.msk.f32.vlgmr.msra.gmra.mrb[0].mxu0 %vm52_vm1, %v42_v11  ;;  %1045 = vmatpush3.bf16.msra.mxu1 %v1240_v10 }
  0x1c   :  { %1048 = vmatpush3.bf16.msra.mxu0 %v1231_v5  ;;  %957 = vmatprep.mubr.msk.f32.mxu0 %vm1169_vm0, %v1170_v1  ;;  %p1146_p11 = por %p1145_p10, %p1144_p9 }
  0x1d   :  { %1049 = vmatprep.subr.bf16.mxu0 %v1168_v0  ;;  %1052 = vmatprep.subr.bf16.mxu1 %v1168_v0 }
  0x1e   :  { %947 = vmatmul.mubr.f32.vlgmr.msra.gmra.mrb[0].mxu1 %v1170_v1  ;;  %p1147_p12 = pnand %p1146_p11, %p1140_p8 }
  0x1f   :  { %1054 = vmatpush3.bf16.msra.mxu1 %v1231_v5  ;;  %968 = vmatprep.mubr.msk.f32.mxu1 %vm1169_vm0, %v1170_v1 }
  0x20   :  { %1051 = vmatpush3.bf16.msra.mxu0 %v1240_v10  ;;  %1055 = vmatprep.subr.bf16.mxu1 %v1168_v0 }
  0x21   :  { %1058 = vmatprep.subr.bf16.mxu0 %v1168_v0 }
  0x23   :  { %1057 = vmatpush3.bf16.msra.mxu1 %v1240_v10 }
  0x24   :  { %1064 = vmatprep.subr.bf16.mxu1 %v1168_v0 }
  0xee   :  { %v122_v13 = vpop.f32.mrb[0].mxu0 }
  0xef   :  { %v1265_v14 = vadd.f32 %v872_v12, %v122_v13  ;;  %v937_v15 = vpop.f32.mrb[1].mxu0 }
  0xf1   :  { %v196_v16 = vpop.f32.mrb[0].mxu1 }
  0xf2   :  { %v200_v17 = vadd.f32 %v196_v16, %v1265_v14  ;;  %v948_v18 = vpop.f32.mrb[1].mxu1 }
  0xf4   :  { %1101 = vtanh.f32 %v200_v17 }
  0xfe   :  { %v1102_v19 = vpop.eup %1101 }
  0xff   :  { %203 = vst.msk [vmem:[#allocation2] sm:$0x1] %vm202_vm2, %v1102_v19  ;;  %958 = vmatmul.mubr.msk.f32.vlgmr.msra.gmra.mrb[2].mxu0 %vm126_vm3, %v1102_v19 }
 0x100   :  { %1060 = vmatpush3.bf16.msra.mxu0 %v1231_v5  ;;  %979 = vmatprep.mubr.msk.f32.mxu0 %vm1169_vm0, %v1170_v1 }
 0x101   :  { %1061 = vmatprep.subr.bf16.mxu0 %v1168_v0 }
 0x104   :  { %1063 = vmatpush3.bf16.msra.mxu0 %v1240_v10 }
 0x105   :  { %1070 = vmatprep.subr.bf16.mxu0 %v1168_v0 }
 0x1d2   :  { %v273_v20 = vpop.f32.mrb[2].mxu0 }
 0x1d3   :  { %v278_v21 = vrot.slane %v273_v20, 7  ;;  %v959_v22 = vpop.f32.mrb[3].mxu0 }
 0x1d5   :  { %v280_v23 = vadd.f32 %v278_v21, %v1265_v14 }
 0x1d7   :  { %1103 = vtanh.f32 %v280_v23 }
 0x1e1   :  { %v1104_v24 = vpop.eup %1103 }
 0x1e2   :  { %283 = vst.msk [vmem:[#allocation2] sm:$0x2] %vm282_vm4, %v1104_v24  ;;  %v285_v25 = vrot.slane %v1104_v24, 1 }
 0x1e4   :  { %969 = vmatmul.mubr.msk.f32.vlgmr.msra.gmra.mrb[2].mxu1 %vm126_vm3, %v285_v25 }
 0x1e5   :  { %1066 = vmatpush3.bf16.msra.mxu1 %v1231_v5  ;;  %990 = vmatprep.mubr.msk.f32.mxu1 %vm1169_vm0, %v1170_v1 }
 0x1e6   :  { %1067 = vmatprep.subr.bf16.mxu1 %v1168_v0 }
 0x1e9   :  { %1069 = vmatpush3.bf16.msra.mxu1 %v1240_v10 }
 0x1ea   :  { %1076 = vmatprep.subr.bf16.mxu1 %v1168_v0 }
 0x2b7   :  { %v354_v26 = vpop.f32.mrb[2].mxu1 }
 0x2b8   :  { %v359_v27 = vrot.slane %v354_v26, 6  ;;  %v970_v28 = vpop.f32.mrb[3].mxu1 }
 0x2ba   :  { %v361_v29 = vadd.f32 %v359_v27, %v1265_v14 }
 0x2bc   :  { %1105 = vtanh.f32 %v361_v29 }
 0x2c6   :  { %v1106_v30 = vpop.eup %1105 }
 0x2c7   :  { %364 = vst.msk [vmem:[#allocation2] sm:$0x4] %vm363_vm5, %v1106_v30  ;;  %v366_v31 = vrot.slane %v1106_v30, 2 }
 0x2c9   :  { %980 = vmatmul.mubr.msk.f32.vlgmr.msra.gmra.mrb[4].mxu0 %vm126_vm3, %v366_v31 }
 0x2ca   :  { %1072 = vmatpush3.bf16.msra.mxu0 %v1231_v5  ;;  %1001 = vmatprep.mubr.msk.f32.mxu0 %vm1169_vm0, %v1170_v1 }
 0x2cb   :  { %1073 = vmatprep.subr.bf16.mxu0 %v1168_v0 }
 0x2ce   :  { %1075 = vmatpush3.bf16.msra.mxu0 %v1240_v10 }
 0x2cf   :  { %1082 = vmatprep.subr.bf16.mxu0 %v1168_v0 }
 0x39c   :  { %v435_v32 = vpop.f32.mrb[4].mxu0 }
 0x39d   :  { %v440_v33 = vrot.slane %v435_v32, 5  ;;  %v981_v34 = vpop.f32.mrb[5].mxu0 }
 0x39f   :  { %v442_v35 = vadd.f32 %v440_v33, %v1265_v14 }
 0x3a1   :  { %1107 = vtanh.f32 %v442_v35 }
 0x3ab   :  { %v1108_v36 = vpop.eup %1107 }
 0x3ac   :  { %445 = vst.msk [vmem:[#allocation2] sm:$0x8] %vm444_vm6, %v1108_v36  ;;  %v447_v37 = vrot.slane %v1108_v36, 3 }
 0x3ae   :  { %991 = vmatmul.mubr.msk.f32.vlgmr.msra.gmra.mrb[4].mxu1 %vm126_vm3, %v447_v37 }
 0x3af   :  { %1078 = vmatpush3.bf16.msra.mxu1 %v1231_v5  ;;  %1012 = vmatprep.mubr.msk.f32.mxu1 %vm1169_vm0, %v1170_v1 }
 0x3b0   :  { %1079 = vmatprep.subr.bf16.mxu1 %v1168_v0 }
 0x3b3   :  { %1081 = vmatpush3.bf16.msra.mxu1 %v1240_v10 }
 0x3b4   :  { %1088 = vmatprep.subr.bf16.mxu1 %v1168_v0 }
 0x481   :  { %v516_v38 = vpop.f32.mrb[4].mxu1 }
 0x482   :  { %v521_v39 = vrot.slane %v516_v38, 4  ;;  %v992_v40 = vpop.f32.mrb[5].mxu1 }
 0x484   :  { %v523_v41 = vadd.f32 %v521_v39, %v1265_v14 }
 0x486   :  { %1109 = vtanh.f32 %v523_v41 }
 0x490   :  { %v1110_v42 = vpop.eup %1109 }
 0x491   :  { %526 = vst.msk [vmem:[#allocation2] sm:$0x10] %vm525_vm7, %v1110_v42  ;;  %v528_v43 = vrot.slane %v1110_v42, 4 }
 0x493   :  { %1002 = vmatmul.mubr.msk.f32.vlgmr.msra.gmra.mrb[6].mxu0 %vm126_vm3, %v528_v43 }
 0x494   :  { %1084 = vmatpush3.bf16.msra.mxu0 %v1231_v5  ;;  %1023 = vmatprep.mubr.msk.f32.mxu0 %vm1169_vm0, %v1170_v1  ;;  %v881_v5 = vld [vmem:[%s1347_s5] ss:$0 sm:$0xff] }
 0x495   :  { %1085 = vmatprep.subr.bf16.mxu0 %v1168_v0 }
 0x498   :  { %1087 = vmatpush3.bf16.msra.mxu0 %v1240_v10 }
 0x566   :  { %v597_v44 = vpop.f32.mrb[6].mxu0 }
 0x567   :  { %v602_v45 = vrot.slane %v597_v44, 3  ;;  %v1003_v46 = vpop.f32.mrb[7].mxu0 }
 0x569   :  { %v604_v47 = vadd.f32 %v602_v45, %v1265_v14 }
 0x56b   :  { %1111 = vtanh.f32 %v604_v47 }
 0x575   :  { %v1112_v48 = vpop.eup %1111 }
 0x576   :  { %607 = vst.msk [vmem:[#allocation2] sm:$0x20] %vm606_vm8, %v1112_v48  ;;  %v609_v49 = vrot.slane %v1112_v48, 5 }
 0x578   :  { %1013 = vmatmul.mubr.msk.f32.vlgmr.msra.gmra.mrb[6].mxu1 %vm126_vm3, %v609_v49 }
 0x579   :  { %1034 = vmatprep.mubr.msk.f32.mxu1 %vm1169_vm0, %v1170_v1  ;;  %1090 = vmatpush3.bf16.msra.mxu1 %v1089_v58 }
 0x57a   :  { %1091 = vmatprep.subr.bf16.mxu1 %v1168_v0 }
 0x57d   :  { %1093 = vmatpush3.bf16.msra.mxu1 %v1092_v61 }
 0x64b   :  { %v678_v50 = vpop.f32.mrb[6].mxu1 }
 0x64c   :  { %v683_v51 = vrot.slane %v678_v50, 2  ;;  %v1014_v52 = vpop.f32.mrb[7].mxu1 }
 0x64e   :  { %v685_v53 = vadd.f32 %v683_v51, %v1265_v14 }
 0x650   :  { %1113 = vtanh.f32 %v685_v53 }
 0x65a   :  { %v1114_v54 = vpop.eup %1113 }
 0x65b   :  { %688 = vst.msk [vmem:[#allocation2] sm:$0x40] %vm687_vm9, %v1114_v54  ;;  %v690_v55 = vrot.slane %v1114_v54, 6 }
 0x65d   :  { %1024 = vmatmul.mubr.msk.f32.vlgmr.msra.gmra.mrb[8].mxu0 %vm126_vm3, %v690_v55 }
 0x730   :  { %v759_v62 = vpop.f32.mrb[8].mxu0 }
 0x731   :  { %v764_v63 = vrot.slane %v759_v62, 1  ;;  %v1025_v1 = vpop.f32.mrb[9].mxu0 }
 0x733   :  { %v766_v2 = vadd.f32 %v764_v63, %v1265_v14 }
 0x735   :  { %1115 = vtanh.f32 %v766_v2 }
 0x73f   :  { %v1116_v3 = vpop.eup %1115 }
 0x740   :  { %769 = vst.msk [vmem:[#allocation2] sm:$0x80] %vm768_vm10, %v1116_v3 }
 0x747   :  { %v770_v4 = vld [vmem:[#allocation2] sm:$0xff] }
 0x748   :  { %1035 = vmatmul.mubr.msk.f32.vlgmr.msra.gmra.mrb[8].mxu1 %vm126_vm3, %v770_v4 }
 0x81b   :  { %v851_v0 = vpop.f32.mrb[8].mxu1 }
 0x81c   :  { %v852_v6 = vadd.f32 %v881_v5, %v851_v0  ;;  %v1036_v7 = vpop.f32.mrb[9].mxu1 }
 0x81e   :  { %856 = vst.msk [vmem:[#allocation6] sm:$0xff] %vm855_vm11, %v852_v6 }
 0x81f   :  { %1150 = shalt.err (!%p1147_p12)
}
 0x820   :  { %s1151_s9 = scalar_lea.hbm %s1348_s6, 128 }
 0x821   :  { %p1152_p13 = scmp.ne.s32.totalorder %s1348_s6, %s1151_s9  ;;  %p1155_p0 = scmp.lt.u32.totalorder %s1151_s9, %s1348_s6 }
 0x823   :  { %p1157_p1 = pnand %p1155_p0, %p1152_p13 }
 0x825   :  { %1160 = shalt.err (!%p1157_p1)
}
 0x826   :  { %866 = dma.vmem_to_hbm [thread:$0]  %s864_s29, 128, %s1348_s6, [#allocation5]  }
 0x827   :  { %1163 = dma.done.wait [#allocation5], 128  }
 0x828   :  { %1164 = vsyncadd [#allocation5], 4294967168 }
 0x829   :  { %870 = vsyncpa [#allocation4], 1 }
 0x82a   :  { %871 = vsyncpa [#allocation5], 1 }

</bundles_post_ra>
